<compile_context>
chip_gen: v7x
topology: tpu7x:2x2x1
jax: 0.10.0
libtpu: 0.0.40
codegen_flags: <defaults>
</compile_context>

<pallas_src>
import functools

import jax
import jax.numpy as jnp
from jax import lax
from jax.experimental import pallas as pl
from jax.experimental.pallas import tpu as pltpu

_INV_SQRT2 = 0.7071067811865476


def _round_up(x, m):
    return ((x + m - 1) // m) * m


def _gelu(h, approx):
    if approx:
        # tanh-approx GELU runs on the otherwise-idle EUP slot (opt-in only;
        # default keeps exact torch.nn.GELU semantics).
        return jax.nn.gelu(h, approximate=True)
    return 0.5 * h * (1.0 + lax.erf(h * jnp.float32(_INV_SQRT2)))


def _resident_kernel(x_ref, w_ref, v_ref, o_ref, *, num_layers, mxu_dtype, approx_gelu):
    """All N residual blocks for one batch tile in a single grid step.

    x_ref : (bt, d_pad)        f32        activations (lane-dense)
    w_ref : (N, d_pad, d_pad)  mxu_dtype  stacked W_i, VMEM-resident (Buffered(1))
    v_ref : (N, d_pad, d_pad)  mxu_dtype  stacked V_i, VMEM-resident (Buffered(1))
    o_ref : (bt, d_pad)        f32
    """
    inv_n = jnp.float32(1.0 / num_layers)

    def layer(i, x):
        h = jnp.dot(x.astype(mxu_dtype), w_ref[i],
                    preferred_element_type=jnp.float32)
        g = _gelu(h, approx_gelu)
        upd = jnp.dot(g.astype(mxu_dtype), v_ref[i],
                      preferred_element_type=jnp.float32)
        return x + upd * inv_n

    x0 = x_ref[...].astype(jnp.float32)
    x_out = lax.fori_loop(0, num_layers, layer, x0, unroll=True)
    o_ref[...] = x_out.astype(o_ref.dtype)


def _streaming_kernel(x_ref, w_ref, v_ref, o_ref, acc_ref, *, num_layers,
                      mxu_dtype, approx_gelu):
    """One residual block per grid step along an 'arbitrary' layer axis.

    The activation tile is carried across layers in acc_ref (f32 VMEM scratch);
    per-layer W_i / V_i are streamed (default double-buffered) from HBM.
    """
    l = pl.program_id(1)
    inv_n = jnp.float32(1.0 / num_layers)

    @pl.when(l == 0)
    def _():
        acc_ref[...] = x_ref[...].astype(jnp.float32)

    x = acc_ref[...]
    h = jnp.dot(x.astype(mxu_dtype), w_ref[...],
                preferred_element_type=jnp.float32)
    g = _gelu(h, approx_gelu)
    upd = jnp.dot(g.astype(mxu_dtype), v_ref[...],
                  preferred_element_type=jnp.float32)
    acc_ref[...] = x + upd * inv_n

    @pl.when(l == num_layers - 1)
    def _():
        o_ref[...] = acc_ref[...].astype(o_ref.dtype)


def prepare_resnet_weights(W_stack, V_stack, *, mxu_dtype=jnp.bfloat16):
    """One-time pad + cast of the (N, d, d) weight stacks (hoist out of the
    per-call hot path; reuse the returned padded stacks every forward)."""
    N, d, _ = W_stack.shape
    d_pad = _round_up(d, 128)
    W_p = jnp.zeros((N, d_pad, d_pad), mxu_dtype).at[:, :d, :d].set(
        W_stack.astype(mxu_dtype))
    V_p = jnp.zeros((N, d_pad, d_pad), mxu_dtype).at[:, :d, :d].set(
        V_stack.astype(mxu_dtype))
    return W_p, V_p


def _pick_batch_tile(B):
    # >= 2 batch tiles whenever B permits (v7x has 2 TensorCores); 256-row
    # tiles for big batches (256-wide v6e/v7x MXUs); sublane-aligned otherwise.
    if B >= 512:
        return 256
    if B >= 256:
        return 128
    if B >= 16:
        return _round_up((B + 1) // 2, 8)
    return _round_up(max(B, 1), 8)


def resnet_forward_prepared(x, W_p, V_p, *, batch_tile=None, approx_gelu=False,
                            force_streaming=False):
    """x: (B, d) f32; W_p/V_p: padded (N, d_pad, d_pad) stacks from
    prepare_resnet_weights. Returns (B, d) f32.

    Note: matmul operands are cast to W_p.dtype each layer (f32 accumulation),
    so with bf16 weights the residual stream is re-quantized per layer; error
    compounds with N relative to pure-f32 torch semantics."""
    B, d = x.shape
    N, d_pad, _ = W_p.shape
    mxu_dtype = W_p.dtype
    assert V_p.shape == W_p.shape and d_pad % 128 == 0 and d <= d_pad

    if batch_tile is None:
        batch_tile = _pick_batch_tile(B)
    B_pad = _round_up(B, batch_tile)

    # Zero-padding is exact: GELU(0)=0, so padded rows/cols stay zero through
    # both matmuls and the top-left (B, d) block equals the unpadded result.
    x_p = jnp.zeros((B_pad, d_pad), jnp.float32).at[:B, :d].set(
        x.astype(jnp.float32))

    itemsize = jnp.dtype(mxu_dtype).itemsize
    weight_bytes = 2 * N * d_pad * d_pad * itemsize       # resident, single-buffered
    io_bytes = 2 * 2 * batch_tile * d_pad * 4             # double-buffered x/out tiles
    # Resident design only when it comfortably fits v7x's 64 MiB/TC VMEM.
    use_resident = (weight_bytes + io_bytes <= (40 << 20)) and not force_streaming

    cost = pl.CostEstimate(
        flops=4 * N * B_pad * d_pad * d_pad,
        transcendentals=N * B_pad * d_pad,
        bytes_accessed=2 * B_pad * d_pad * 4 + 2 * N * d_pad * d_pad * itemsize,
    )

    if use_resident:
        need = weight_bytes + io_bytes
        kernel = functools.partial(_resident_kernel, num_layers=N,
                                   mxu_dtype=mxu_dtype, approx_gelu=approx_gelu)
        out_p = pl.pallas_call(
            kernel,
            out_shape=jax.ShapeDtypeStruct((B_pad, d_pad), x.dtype),
            grid_spec=pltpu.PrefetchScalarGridSpec(
                num_scalar_prefetch=0,
                grid=(B_pad // batch_tile,),  # independent batch tiles
                in_specs=[
                    pl.BlockSpec((batch_tile, d_pad), lambda b: (b, 0)),
                    # Grid-invariant weight stacks: single-buffer them so they
                    # don't pay 2x VMEM for pipelining they can't use.
                    pl.BlockSpec((N, d_pad, d_pad), lambda b: (0, 0, 0),
                                 pipeline_mode=pl.Buffered(1)),
                    pl.BlockSpec((N, d_pad, d_pad), lambda b: (0, 0, 0),
                                 pipeline_mode=pl.Buffered(1)),
                ],
                out_specs=pl.BlockSpec((batch_tile, d_pad), lambda b: (b, 0)),
            ),
            compiler_params=pltpu.CompilerParams(
                dimension_semantics=("parallel",),
                vmem_limit_bytes=int(min(max(need + (8 << 20), 16 << 20), 96 << 20)),
            ),
            cost_estimate=cost,
        )(x_p, W_p, V_p)
    else:
        # Streaming fallback for large d (esp. v7x 64 MiB/TC): layer axis is
        # 'arbitrary'; per-layer weights are pipelined while the activation
        # tile lives in a VMEM scratch across layers.
        need = (2 * 2 * d_pad * d_pad * itemsize + io_bytes
                + batch_tile * d_pad * 4)
        kernel = functools.partial(_streaming_kernel, num_layers=N,
                                   mxu_dtype=mxu_dtype, approx_gelu=approx_gelu)
        out_p = pl.pallas_call(
            kernel,
            out_shape=jax.ShapeDtypeStruct((B_pad, d_pad), x.dtype),
            grid_spec=pltpu.PrefetchScalarGridSpec(
                num_scalar_prefetch=0,
                grid=(B_pad // batch_tile, N),
                in_specs=[
                    pl.BlockSpec((batch_tile, d_pad), lambda b, l: (b, 0)),
                    pl.BlockSpec((None, d_pad, d_pad), lambda b, l: (l, 0, 0)),
                    pl.BlockSpec((None, d_pad, d_pad), lambda b, l: (l, 0, 0)),
                ],
                out_specs=pl.BlockSpec((batch_tile, d_pad), lambda b, l: (b, 0)),
                scratch_shapes=[pltpu.VMEM((batch_tile, d_pad), jnp.float32)],
            ),
            compiler_params=pltpu.CompilerParams(
                dimension_semantics=("parallel", "arbitrary"),
                vmem_limit_bytes=int(min(max(need + (8 << 20), 16 << 20), 96 << 20)),
            ),
            cost_estimate=cost,
        )(x_p, W_p, V_p)

    return out_p[:B, :d]


def resnet_forward(x, W_stack, V_stack, *, mxu_dtype=jnp.bfloat16, **kw):
    """Convenience wrapper: pads/casts weights per call. Prefer calling
    prepare_resnet_weights() once and resnet_forward_prepared() per step."""
    W_p, V_p = prepare_resnet_weights(W_stack, V_stack, mxu_dtype=mxu_dtype)
    return resnet_forward_prepared(x, W_p, V_p, **kw)


def resnet_reference(x, W_stack, V_stack, *, mxu_dtype=None):
    """Pure-JAX reference. mxu_dtype=None -> exact f32 (torch semantics);
    otherwise quantizes matmul operands the same way the kernel does."""
    N = W_stack.shape[0]
    cast = (lambda a: a) if mxu_dtype is None else (lambda a: a.astype(mxu_dtype))
    for i in range(N):
        h = jnp.dot(cast(x), cast(W_stack[i]), preferred_element_type=jnp.float32)
        g = 0.5 * h * (1.0 + lax.erf(h * jnp.float32(_INV_SQRT2)))
        x = x + jnp.dot(cast(g), cast(V_stack[i]),
                        preferred_element_type=jnp.float32) / N
    return x


if __name__ == "__main__":
    d = 16   # matches module-level d = 16 in the PyTorch script
    B = 8    # batch
    N = 4    # number of residual blocks

    key = jax.random.PRNGKey(0)
    kx, kw, kv = jax.random.split(key, 3)
    x = jax.random.normal(kx, (B, d), dtype=jnp.float32)
    W_stack = jax.random.normal(kw, (N, d, d), dtype=jnp.float32) * 0.1
    V_stack = jax.random.normal(kv, (N, d, d), dtype=jnp.float32) * 0.1

    # One-time weight preparation (hoisted out of the per-call hot path).
    Wb, Vb = prepare_resnet_weights(W_stack, V_stack, mxu_dtype=jnp.bfloat16)
    Wf, Vf = prepare_resnet_weights(W_stack, V_stack, mxu_dtype=jnp.float32)

    # Resident path, bf16 MXU operands / f32 accumulation.
    out_bf16 = jax.block_until_ready(resnet_forward_prepared(x, Wb, Vb))
    # Resident path, exact f32.
    out_f32 = jax.block_until_ready(resnet_forward_prepared(x, Wf, Vf))
    # Streaming (large-d / v7x) fallback path, exercised for correctness.
    out_stream = jax.block_until_ready(
        resnet_forward_prepared(x, Wb, Vb, force_streaming=True))

    ref_exact = resnet_reference(x, W_stack, V_stack, mxu_dtype=None)
    ref_bf16 = resnet_reference(x, W_stack, V_stack, mxu_dtype=jnp.bfloat16)

    assert out_f32.shape == (B, d) and out_bf16.shape == (B, d)
    assert jnp.allclose(out_f32, ref_exact, atol=1e-5, rtol=1e-5), \
        "f32 kernel mismatch vs exact reference"
    assert jnp.allclose(out_bf16, ref_bf16, atol=1e-4, rtol=1e-4), \
        "bf16 kernel mismatch vs bf16-matmul reference"
    assert jnp.allclose(out_stream, ref_bf16, atol=1e-4, rtol=1e-4), \
        "streaming kernel mismatch vs bf16-matmul reference"
    assert jnp.allclose(out_bf16, ref_exact, atol=5e-2, rtol=5e-2), \
        "bf16 kernel too far from exact reference"

    print("KERNEL_OK")
</pallas_src>

<mosaic_0001>
module attributes {stable_mosaic.version = 11 : i64} {
  func.func @_resident_kernel(%arg0: i32, %arg1: memref<8x128xf32, #tpu.memory_space<vmem>>, %arg2: memref<4x128x128xbf16, #tpu.memory_space<vmem>>, %arg3: memref<4x128x128xbf16, #tpu.memory_space<vmem>>, %arg4: memref<8x128xf32, #tpu.memory_space<vmem>>) attributes {dimension_semantics = [#tpu.dimension_semantics<parallel>], iteration_bounds = array<i64: 1>, scalar_prefetch = 0 : i64, scratch_operands = 0 : i64, tpu.core_type = #tpu.core_type<tc>, window_params = [{transform_indices = @transform_0, window_bounds = array<i64: 8, 128>}, {pipeline_mode = #tpu.pipeline_mode<synchronous>, transform_indices = @transform_1, window_bounds = array<i64: 4, 128, 128>}, {pipeline_mode = #tpu.pipeline_mode<synchronous>, transform_indices = @transform_2, window_bounds = array<i64: 4, 128, 128>}, {transform_indices = @transform_3, window_bounds = array<i64: 8, 128>}]} {
    %c0 = arith.constant 0 : index
    %c0_0 = arith.constant 0 : index
    %0 = vector.load %arg1[%c0, %c0_0] : memref<8x128xf32, #tpu.memory_space<vmem>>, vector<8x128xf32>
    %cst = arith.constant 2.500000e-01 : f32
    %c0_i32 = arith.constant 0 : i32
    %1 = arith.truncf %0 : vector<8x128xf32> to vector<8x128xbf16>
    %2 = arith.index_cast %c0_i32 : i32 to index
    %c0_1 = arith.constant 0 : index
    %c0_2 = arith.constant 0 : index
    %3 = vector.load %arg2[%2, %c0_1, %c0_2] : memref<4x128x128xbf16, #tpu.memory_space<vmem>>, vector<1x128x128xbf16>
    %4 = vector.shape_cast %3 : vector<1x128x128xbf16> to vector<128x128xbf16>
    %cst_3 = arith.constant dense<0.000000e+00> : vector<8x128xf32>
    %5 = tpu.matmul %1, %4, %cst_3 {dimension_numbers = #tpu.dot_dimension_numbers<[1], [0], [0], [1], [0, 0, 1, 1], [], []>} : vector<8x128xbf16>, vector<128x128xbf16>, vector<8x128xf32> -> vector<8x128xf32>
    %cst_4 = arith.constant 5.000000e-01 : f32
    %6 = vector.broadcast %cst_4 : f32 to vector<8x128xf32>
    %7 = arith.mulf %6, %5 : vector<8x128xf32>
    %cst_5 = arith.constant 0.707106769 : f32
    %8 = vector.broadcast %cst_5 : f32 to vector<8x128xf32>
    %9 = arith.mulf %5, %8 : vector<8x128xf32>
    %10 = math.erf %9 : vector<8x128xf32>
    %cst_6 = arith.constant 1.000000e+00 : f32
    %11 = vector.broadcast %cst_6 : f32 to vector<8x128xf32>
    %12 = arith.addf %11, %10 : vector<8x128xf32>
    %13 = arith.mulf %7, %12 : vector<8x128xf32>
    %14 = arith.truncf %13 : vector<8x128xf32> to vector<8x128xbf16>
    %15 = arith.index_cast %c0_i32 : i32 to index
    %c0_7 = arith.constant 0 : index
    %c0_8 = arith.constant 0 : index
    %16 = vector.load %arg3[%15, %c0_7, %c0_8] : memref<4x128x128xbf16, #tpu.memory_space<vmem>>, vector<1x128x128xbf16>
    %17 = vector.shape_cast %16 : vector<1x128x128xbf16> to vector<128x128xbf16>
    %cst_9 = arith.constant dense<0.000000e+00> : vector<8x128xf32>
    %18 = tpu.matmul %14, %17, %cst_9 {dimension_numbers = #tpu.dot_dimension_numbers<[1], [0], [0], [1], [0, 0, 1, 1], [], []>} : vector<8x128xbf16>, vector<128x128xbf16>, vector<8x128xf32> -> vector<8x128xf32>
    %19 = vector.broadcast %cst : f32 to vector<8x128xf32>
    %20 = arith.mulf %18, %19 : vector<8x128xf32>
    %21 = arith.addf %0, %20 : vector<8x128xf32>
    %c1_i32 = arith.constant 1 : i32
    %22 = arith.truncf %21 : vector<8x128xf32> to vector<8x128xbf16>
    %23 = arith.index_cast %c1_i32 : i32 to index
    %c0_10 = arith.constant 0 : index
    %c0_11 = arith.constant 0 : index
    %24 = vector.load %arg2[%23, %c0_10, %c0_11] : memref<4x128x128xbf16, #tpu.memory_space<vmem>>, vector<1x128x128xbf16>
    %25 = vector.shape_cast %24 : vector<1x128x128xbf16> to vector<128x128xbf16>
    %cst_12 = arith.constant dense<0.000000e+00> : vector<8x128xf32>
    %26 = tpu.matmul %22, %25, %cst_12 {dimension_numbers = #tpu.dot_dimension_numbers<[1], [0], [0], [1], [0, 0, 1, 1], [], []>} : vector<8x128xbf16>, vector<128x128xbf16>, vector<8x128xf32> -> vector<8x128xf32>
    %cst_13 = arith.constant 5.000000e-01 : f32
    %27 = vector.broadcast %cst_13 : f32 to vector<8x128xf32>
    %28 = arith.mulf %27, %26 : vector<8x128xf32>
    %cst_14 = arith.constant 0.707106769 : f32
    %29 = vector.broadcast %cst_14 : f32 to vector<8x128xf32>
    %30 = arith.mulf %26, %29 : vector<8x128xf32>
    %31 = math.erf %30 : vector<8x128xf32>
    %cst_15 = arith.constant 1.000000e+00 : f32
    %32 = vector.broadcast %cst_15 : f32 to vector<8x128xf32>
    %33 = arith.addf %32, %31 : vector<8x128xf32>
    %34 = arith.mulf %28, %33 : vector<8x128xf32>
    %35 = arith.truncf %34 : vector<8x128xf32> to vector<8x128xbf16>
    %36 = arith.index_cast %c1_i32 : i32 to index
    %c0_16 = arith.constant 0 : index
    %c0_17 = arith.constant 0 : index
    %37 = vector.load %arg3[%36, %c0_16, %c0_17] : memref<4x128x128xbf16, #tpu.memory_space<vmem>>, vector<1x128x128xbf16>
    %38 = vector.shape_cast %37 : vector<1x128x128xbf16> to vector<128x128xbf16>
    %cst_18 = arith.constant dense<0.000000e+00> : vector<8x128xf32>
    %39 = tpu.matmul %35, %38, %cst_18 {dimension_numbers = #tpu.dot_dimension_numbers<[1], [0], [0], [1], [0, 0, 1, 1], [], []>} : vector<8x128xbf16>, vector<128x128xbf16>, vector<8x128xf32> -> vector<8x128xf32>
    %40 = vector.broadcast %cst : f32 to vector<8x128xf32>
    %41 = arith.mulf %39, %40 : vector<8x128xf32>
    %42 = arith.addf %21, %41 : vector<8x128xf32>
    %c2_i32 = arith.constant 2 : i32
    %43 = arith.truncf %42 : vector<8x128xf32> to vector<8x128xbf16>
    %44 = arith.index_cast %c2_i32 : i32 to index
    %c0_19 = arith.constant 0 : index
    %c0_20 = arith.constant 0 : index
    %45 = vector.load %arg2[%44, %c0_19, %c0_20] : memref<4x128x128xbf16, #tpu.memory_space<vmem>>, vector<1x128x128xbf16>
    %46 = vector.shape_cast %45 : vector<1x128x128xbf16> to vector<128x128xbf16>
    %cst_21 = arith.constant dense<0.000000e+00> : vector<8x128xf32>
    %47 = tpu.matmul %43, %46, %cst_21 {dimension_numbers = #tpu.dot_dimension_numbers<[1], [0], [0], [1], [0, 0, 1, 1], [], []>} : vector<8x128xbf16>, vector<128x128xbf16>, vector<8x128xf32> -> vector<8x128xf32>
    %cst_22 = arith.constant 5.000000e-01 : f32
    %48 = vector.broadcast %cst_22 : f32 to vector<8x128xf32>
    %49 = arith.mulf %48, %47 : vector<8x128xf32>
    %cst_23 = arith.constant 0.707106769 : f32
    %50 = vector.broadcast %cst_23 : f32 to vector<8x128xf32>
    %51 = arith.mulf %47, %50 : vector<8x128xf32>
    %52 = math.erf %51 : vector<8x128xf32>
    %cst_24 = arith.constant 1.000000e+00 : f32
    %53 = vector.broadcast %cst_24 : f32 to vector<8x128xf32>
    %54 = arith.addf %53, %52 : vector<8x128xf32>
    %55 = arith.mulf %49, %54 : vector<8x128xf32>
    %56 = arith.truncf %55 : vector<8x128xf32> to vector<8x128xbf16>
    %57 = arith.index_cast %c2_i32 : i32 to index
    %c0_25 = arith.constant 0 : index
    %c0_26 = arith.constant 0 : index
    %58 = vector.load %arg3[%57, %c0_25, %c0_26] : memref<4x128x128xbf16, #tpu.memory_space<vmem>>, vector<1x128x128xbf16>
    %59 = vector.shape_cast %58 : vector<1x128x128xbf16> to vector<128x128xbf16>
    %cst_27 = arith.constant dense<0.000000e+00> : vector<8x128xf32>
    %60 = tpu.matmul %56, %59, %cst_27 {dimension_numbers = #tpu.dot_dimension_numbers<[1], [0], [0], [1], [0, 0, 1, 1], [], []>} : vector<8x128xbf16>, vector<128x128xbf16>, vector<8x128xf32> -> vector<8x128xf32>
    %61 = vector.broadcast %cst : f32 to vector<8x128xf32>
    %62 = arith.mulf %60, %61 : vector<8x128xf32>
    %63 = arith.addf %42, %62 : vector<8x128xf32>
    %c3_i32 = arith.constant 3 : i32
    %64 = arith.truncf %63 : vector<8x128xf32> to vector<8x128xbf16>
    %65 = arith.index_cast %c3_i32 : i32 to index
    %c0_28 = arith.constant 0 : index
    %c0_29 = arith.constant 0 : index
    %66 = vector.load %arg2[%65, %c0_28, %c0_29] : memref<4x128x128xbf16, #tpu.memory_space<vmem>>, vector<1x128x128xbf16>
    %67 = vector.shape_cast %66 : vector<1x128x128xbf16> to vector<128x128xbf16>
    %cst_30 = arith.constant dense<0.000000e+00> : vector<8x128xf32>
    %68 = tpu.matmul %64, %67, %cst_30 {dimension_numbers = #tpu.dot_dimension_numbers<[1], [0], [0], [1], [0, 0, 1, 1], [], []>} : vector<8x128xbf16>, vector<128x128xbf16>, vector<8x128xf32> -> vector<8x128xf32>
    %cst_31 = arith.constant 5.000000e-01 : f32
    %69 = vector.broadcast %cst_31 : f32 to vector<8x128xf32>
    %70 = arith.mulf %69, %68 : vector<8x128xf32>
    %cst_32 = arith.constant 0.707106769 : f32
    %71 = vector.broadcast %cst_32 : f32 to vector<8x128xf32>
    %72 = arith.mulf %68, %71 : vector<8x128xf32>
    %73 = math.erf %72 : vector<8x128xf32>
    %cst_33 = arith.constant 1.000000e+00 : f32
    %74 = vector.broadcast %cst_33 : f32 to vector<8x128xf32>
    %75 = arith.addf %74, %73 : vector<8x128xf32>
    %76 = arith.mulf %70, %75 : vector<8x128xf32>
    %77 = arith.truncf %76 : vector<8x128xf32> to vector<8x128xbf16>
    %78 = arith.index_cast %c3_i32 : i32 to index
    %c0_34 = arith.constant 0 : index
    %c0_35 = arith.constant 0 : index
    %79 = vector.load %arg3[%78, %c0_34, %c0_35] : memref<4x128x128xbf16, #tpu.memory_space<vmem>>, vector<1x128x128xbf16>
    %80 = vector.shape_cast %79 : vector<1x128x128xbf16> to vector<128x128xbf16>
    %cst_36 = arith.constant dense<0.000000e+00> : vector<8x128xf32>
    %81 = tpu.matmul %77, %80, %cst_36 {dimension_numbers = #tpu.dot_dimension_numbers<[1], [0], [0], [1], [0, 0, 1, 1], [], []>} : vector<8x128xbf16>, vector<128x128xbf16>, vector<8x128xf32> -> vector<8x128xf32>
    %82 = vector.broadcast %cst : f32 to vector<8x128xf32>
    %83 = arith.mulf %81, %82 : vector<8x128xf32>
    %84 = arith.addf %63, %83 : vector<8x128xf32>
    %c4_i32 = arith.constant 4 : i32
    %c0_37 = arith.constant 0 : index
    %c0_38 = arith.constant 0 : index
    %85 = vector.load %arg4[%c0_37, %c0_38] : memref<8x128xf32, #tpu.memory_space<vmem>>, vector<8x128xf32>
    tpu.vector_store %arg4[%c0_37, %c0_38], %84 {strides = array<i32>} : memref<8x128xf32, #tpu.memory_space<vmem>>, vector<8x128xf32>,
    return
  }
  func.func @transform_0(%arg0: i32) -> (i32, i32) {
    %c0_i32 = arith.constant 0 : i32
    %c0_i32_0 = arith.constant 0 : i32
    return %arg0, %c0_i32 : i32, i32
  }
  func.func @transform_1(%arg0: i32) -> (i32, i32, i32) {
    %c0_i32 = arith.constant 0 : i32
    %c0_i32_0 = arith.constant 0 : i32
    %c0_i32_1 = arith.constant 0 : i32
    %c0_i32_2 = arith.constant 0 : i32
    return %c0_i32, %c0_i32_0, %c0_i32_1 : i32, i32, i32
  }
  func.func @transform_2(%arg0: i32) -> (i32, i32, i32) {
    %c0_i32 = arith.constant 0 : i32
    %c0_i32_0 = arith.constant 0 : i32
    %c0_i32_1 = arith.constant 0 : i32
    %c0_i32_2 = arith.constant 0 : i32
    return %c0_i32, %c0_i32_0, %c0_i32_1 : i32, i32, i32
  }
  func.func @transform_3(%arg0: i32) -> (i32, i32) {
    %c0_i32 = arith.constant 0 : i32
    %c0_i32_0 = arith.constant 0 : i32
    return %arg0, %c0_i32 : i32, i32
  }
}

</mosaic_0001>

<bundles_post_ra>
// kernel: tpu_custom_call.1
= control target key start
LH: loop header
LB: loop body
LE: loop exit
PB: predicated region body
PF: predicated region fallthrough
CT: control target
= control target key end

     0   :  { %8 = vsyncpa [#allocation3], 0  ;;  %s1594_s0 = inlined_call_operand.hbm [shape: f32[8,128], index: 0, kind: input, shape index: {}]   ;;  %s1595_s1 = inlined_call_operand.hbm [shape: bf16[4,128,128], index: 1, kind: input, shape index: {}]   ;;  %s1596_s2 = inlined_call_operand.hbm [shape: bf16[4,128,128], index: 2, kind: input, shape index: {}]   ;;  %s1597_s3 = inlined_call_operand.hbm [shape: f32[8,128], index: 3, kind: output, shape index: {}]  }
   0x1   :  { %9 = vsyncpa [#allocation6], 0 }
   0x2   :  { %10 = vsyncpa [#allocation4], 0  ;;  %s1417_s12 = smov [#allocation5]   ;;  %s1323_s16 = scalar_lea.hbm %s1595_s1, 4096 }
   0x3   :  { %s26_s13 = sshll.u32 %s1417_s12, 4  ;;  %p1324_p0 = scmp.ne.s32.totalorder %s1595_s1, %s1323_s16  ;;  %s27_s13 = int_to_ptr.vmem [resolvable:$true] %s26_s13 }
   0x4   :  { %p1327_p1 = scmp.lt.u32.totalorder %s1323_s16, %s1595_s1 }
   0x6   :  { %p1329_p2 = pnand %p1327_p1, %p1324_p0 }
   0x8   :  { %1332 = shalt.err (!%p1329_p2)
}
   0x9   :  { %s1333_s21 = scalar_lea.vmem %s27_s13, 4096  ;;  %p1338_p4 = scmp.lt.s32.totalorder %s27_s13, %s27_s13 }
   0xa   :  { %p1334_p3 = scmp.ne.s32.totalorder %s27_s13, %s1333_s21  ;;  %p1339_p5 = scmp.lt.s32.totalorder %s1333_s21, %s1333_s21 }
   0xc   :  { %p1340_p6 = por %p1339_p5, %p1338_p4 }
   0xe   :  { %p1341_p7 = pnand %p1340_p6, %p1334_p3 }
  0x10   :  { %1344 = shalt.err (!%p1341_p7)
}
  0x11   :  { %s1418_s22 = smov 64   ;;  %s1419_s23 = smov 4  }
  0x12   :  { %32 = dma.hbm_to_vmem [thread:$0]  %s1595_s1, 4096, %s27_s13, [#allocation6], %s1418_s22, %s1418_s22, %s1419_s23  }
  0x13   :  { %s1420_s26 = smov [#allocation2]   ;;  %s1421_s28 = smov [#allocation7]  }
  0x14   :  { %s17_s27 = sshll.u32 %s1420_s26, 4  ;;  %s38_s29 = sshll.u32 %s1421_s28, 4  ;;  %s18_s27 = int_to_ptr.vmem [resolvable:$true] %s17_s27  ;;  %s39_s29 = int_to_ptr.vmem [resolvable:$true] %s38_s29 }
  0x15   :  { %s1345_s5 = scalar_lea.hbm %s1594_s0, 128 }
  0x16   :  { %p1346_p8 = scmp.ne.s32.totalorder %s1594_s0, %s1345_s5  ;;  %p1349_p9 = scmp.lt.u32.totalorder %s1345_s5, %s1594_s0 }
  0x18   :  { %p1351_p10 = pnand %p1349_p9, %p1346_p8 }
  0x1a   :  { %1354 = shalt.err (!%p1351_p10)
}
  0x1b   :  { %s1355_s1 = scalar_lea.vmem %s18_s27, 128  ;;  %p1360_p12 = scmp.lt.s32.totalorder %s18_s27, %s18_s27 }
  0x1c   :  { %p1356_p11 = scmp.ne.s32.totalorder %s18_s27, %s1355_s1  ;;  %p1361_p13 = scmp.lt.s32.totalorder %s1355_s1, %s1355_s1 }
  0x1e   :  { %p1362_p0 = por %p1361_p13, %p1360_p12 }
  0x20   :  { %p1363_p1 = pnand %p1362_p0, %p1356_p11 }
  0x22   :  { %1366 = shalt.err (!%p1363_p1)
}
  0x23   :  { %20 = dma.hbm_to_vmem [thread:$0]  %s1594_s0, 128, %s18_s27, [#allocation3]  }
  0x24   :  { %s1367_s14 = scalar_lea.hbm %s1596_s2, 4096 }
  0x25   :  { %p1368_p2 = scmp.ne.s32.totalorder %s1596_s2, %s1367_s14  ;;  %p1371_p3 = scmp.lt.u32.totalorder %s1367_s14, %s1596_s2 }
  0x27   :  { %p1373_p4 = pnand %p1371_p3, %p1368_p2 }
  0x29   :  { %1376 = shalt.err (!%p1373_p4)
}
  0x2a   :  { %s1377_s19 = scalar_lea.vmem %s39_s29, 4096  ;;  %p1382_p6 = scmp.lt.s32.totalorder %s39_s29, %s39_s29 }
  0x2b   :  { %p1378_p5 = scmp.ne.s32.totalorder %s39_s29, %s1377_s19  ;;  %p1383_p7 = scmp.lt.s32.totalorder %s1377_s19, %s1377_s19 }
  0x2d   :  { %p1384_p8 = por %p1383_p7, %p1382_p6 }
  0x2f   :  { %p1385_p9 = pnand %p1384_p8, %p1378_p5 }
  0x31   :  { %1388 = shalt.err (!%p1385_p9)
}
  0x32   :  { %44 = dma.hbm_to_vmem [thread:$0]  %s1596_s2, 4096, %s39_s29, [#allocation6], %s1418_s22, %s1418_s22, %s1419_s23  }
  0x33   :  { %1411 = dma.done.wait [#allocation3], 128  }
  0x34   :  { %1412 = vsyncadd [#allocation3], 4294967168 }
  0x35   :  { %1413 = dma.done.wait [#allocation6], 8192  }
  0x36   :  { %1414 = vsyncadd [#allocation6], 4294959104  ;;  %v1422_v0 = vmov 0.0   ;;  %vm1423_vm0 = vmmov 0   ;;  %v1251_v1 = vld [vmem:[#allocation5] sm:$0xff]   ;;  %v1252_v2 = vld [vmem:[#allocation5 + $0x8] sm:$0xff]  }
  0x37   :  { %1083 = vmatprep.subr.bf16.mxu0 %v1422_v0  ;;  %1099 = vmatprep.mubr.msk.bf16.mxu0 %vm1423_vm0, %v1422_v0  ;;  %v1253_v3 = vld [vmem:[#allocation5 + $0x10] sm:$0xff]   ;;  %v1259_v4 = vld [vmem:[#allocation7] sm:$0xff]   ;;  %v1254_v5 = vld [vmem:[#allocation5 + $0x18] sm:$0xff]   ;;  %s1424_s2 = smov [#allocation8]  }
  0x38   :  { %1103 = vmatprep.subr.bf16.mxu1 %v1422_v0  ;;  %1119 = vmatprep.mubr.msk.bf16.mxu1 %vm1423_vm0, %v1422_v0  ;;  %v1260_v6 = vld [vmem:[#allocation7 + $0x8] sm:$0xff]   ;;  %v1255_v7 = vld [vmem:[#allocation5 + $0x20] sm:$0xff]   ;;  %v1261_v8 = vld [vmem:[#allocation7 + $0x10] sm:$0xff]   ;;  %s937_s21 = sshll.u32 %s1424_s2, 4  ;;  %s938_s21 = int_to_ptr.vmem [resolvable:$true] %s937_s21 }
  0x39   :  { %1084 = vmatpush3.bf16.msra.mxu0 %v1251_v1  ;;  %1104 = vmatpush3.bf16.msra.mxu1 %v1259_v4  ;;  %v1256_v9 = vld [vmem:[#allocation5 + $0x28] sm:$0xff]   ;;  %v1257_v10 = vld [vmem:[#allocation5 + $0x30] sm:$0xff]   ;;  %v1258_v11 = vld [vmem:[#allocation5 + $0x38] sm:$0xff]   ;;  %s1389_s22 = scalar_lea.vmem %s938_s21, 128  ;;  %p1394_p11 = scmp.lt.s32.totalorder %s938_s21, %s938_s21 }
  0x3a   :  { %1085 = vmatprep.subr.bf16.mxu0 %v1422_v0  ;;  %1105 = vmatprep.subr.bf16.mxu1 %v1422_v0  ;;  %v1502_v12 = vld [vmem:[#allocation2] sm:$0xff]  ;;  %v1263_v15 = vld [vmem:[#allocation7 + $0x20] sm:$0xff]   ;;  %v1264_v16 = vld [vmem:[#allocation7 + $0x28] sm:$0xff]   ;;  %p1390_p10 = scmp.ne.s32.totalorder %s938_s21, %s1389_s22  ;;  %p1395_p12 = scmp.lt.s32.totalorder %s1389_s22, %s1389_s22 }
  0x3b   :  { %v56_v13 = vpack.c.bf16 %v1502_v12, %v1502_v12  ;;  %v1262_v14 = vld [vmem:[#allocation7 + $0x18] sm:$0xff]   ;;  %v1265_v17 = vld [vmem:[#allocation7 + $0x30] sm:$0xff]   ;;  %v1267_v19 = vld [vmem:[#allocation5 + $0x40] sm:$0xff]  }
  0x3c   :  { %v1266_v18 = vld [vmem:[#allocation7 + $0x38] sm:$0xff]   ;;  %v1268_v20 = vld [vmem:[#allocation5 + $0x48] sm:$0xff]   ;;  %v1269_v21 = vld [vmem:[#allocation5 + $0x50] sm:$0xff]   ;;  %p1396_p13 = por %p1395_p12, %p1394_p11 }
  0x3d   :  { %1086 = vmatpush3.bf16.msra.mxu0 %v1252_v2  ;;  %1106 = vmatpush3.bf16.msra.mxu1 %v1260_v6  ;;  %v1270_v22 = vld [vmem:[#allocation5 + $0x58] sm:$0xff]   ;;  %v1271_v23 = vld [vmem:[#allocation5 + $0x60] sm:$0xff]   ;;  %v1272_v24 = vld [vmem:[#allocation5 + $0x68] sm:$0xff]  }
  0x3e   :  { %1087 = vmatprep.subr.bf16.mxu0 %v1422_v0  ;;  %1107 = vmatprep.subr.bf16.mxu1 %v1422_v0  ;;  %v1273_v35 = vld [vmem:[#allocation5 + $0x70] sm:$0xff]   ;;  %v1274_v36 = vld [vmem:[#allocation5 + $0x78] sm:$0xff]   ;;  %v1275_v37 = vld [vmem:[#allocation7 + $0x40] sm:$0xff]   ;;  %p1397_p0 = pnand %p1396_p13, %p1390_p10 }
  0x3f   :  { %v1276_v38 = vld [vmem:[#allocation7 + $0x48] sm:$0xff]   ;;  %v1277_v39 = vld [vmem:[#allocation7 + $0x50] sm:$0xff]   ;;  %v1278_v47 = vld [vmem:[#allocation7 + $0x58] sm:$0xff]  }
  0x40   :  { %v1279_v48 = vld [vmem:[#allocation7 + $0x60] sm:$0xff]   ;;  %v1280_v49 = vld [vmem:[#allocation7 + $0x68] sm:$0xff]   ;;  %v1281_v50 = vld [vmem:[#allocation7 + $0x70] sm:$0xff]  }
  0x41   :  { %1088 = vmatpush3.bf16.msra.mxu0 %v1253_v3  ;;  %1108 = vmatpush3.bf16.msra.mxu1 %v1261_v8  ;;  %v1282_v51 = vld [vmem:[#allocation7 + $0x78] sm:$0xff]   ;;  %v1283_v52 = vld [vmem:[#allocation5 + $0x80] sm:$0xff]   ;;  %v1284_v53 = vld [vmem:[#allocation5 + $0x88] sm:$0xff]  }
  0x42   :  { %1089 = vmatprep.subr.bf16.mxu0 %v1422_v0  ;;  %1109 = vmatprep.subr.bf16.mxu1 %v1422_v0  ;;  %v1285_v54 = vld [vmem:[#allocation5 + $0x90] sm:$0xff]   ;;  %v1286_v55 = vld [vmem:[#allocation5 + $0x98] sm:$0xff]   ;;  %v1287_v56 = vld [vmem:[#allocation5 + $0xa0] sm:$0xff]  }
  0x43   :  { %v1288_v57 = vld [vmem:[#allocation5 + $0xa8] sm:$0xff]   ;;  %v1290_v6 = vld [vmem:[#allocation5 + $0xb8] sm:$0xff]  }
  0x44   :  { %v1292_v8 = vld [vmem:[#allocation7 + $0x88] sm:$0xff]  }
  0x45   :  { %1090 = vmatpush3.bf16.msra.mxu0 %v1254_v5  ;;  %1110 = vmatpush3.bf16.msra.mxu1 %v1262_v14  ;;  %v1289_v5 = vld [vmem:[#allocation5 + $0xb0] sm:$0xff]  }
  0x46   :  { %1091 = vmatprep.subr.bf16.mxu0 %v1422_v0  ;;  %1111 = vmatprep.subr.bf16.mxu1 %v1422_v0 }
  0x49   :  { %1092 = vmatpush3.bf16.msra.mxu0 %v1255_v7  ;;  %1112 = vmatpush3.bf16.msra.mxu1 %v1263_v15  ;;  %v1291_v7 = vld [vmem:[#allocation7 + $0x80] sm:$0xff]  }
  0x4a   :  { %1093 = vmatprep.subr.bf16.mxu0 %v1422_v0  ;;  %1113 = vmatprep.subr.bf16.mxu1 %v1422_v0 }
  0x4d   :  { %1094 = vmatpush3.bf16.msra.mxu0 %v1256_v9  ;;  %1114 = vmatpush3.bf16.msra.mxu1 %v1264_v16  ;;  %v1293_v9 = vld [vmem:[#allocation7 + $0x90] sm:$0xff]  }
  0x4e   :  { %1095 = vmatprep.subr.bf16.mxu0 %v1422_v0  ;;  %1115 = vmatprep.subr.bf16.mxu1 %v1422_v0 }
  0x51   :  { %1096 = vmatpush3.bf16.msra.mxu0 %v1257_v10  ;;  %1116 = vmatpush3.bf16.msra.mxu1 %v1265_v17  ;;  %v1294_v17 = vld [vmem:[#allocation7 + $0x98] sm:$0xff]  }
  0x52   :  { %1097 = vmatprep.subr.bf16.mxu0 %v1422_v0  ;;  %1117 = vmatprep.subr.bf16.mxu1 %v1422_v0 }
  0x55   :  { %1098 = vmatpush3.bf16.msra.mxu0 %v1258_v11  ;;  %1118 = vmatpush3.bf16.msra.mxu1 %v1266_v18  ;;  %v1295_v18 = vld [vmem:[#allocation7 + $0xa0] sm:$0xff]  }
  0x56   :  { %1123 = vmatprep.subr.bf16.mxu0 %v1422_v0  ;;  %1143 = vmatprep.subr.bf16.mxu1 %v1422_v0 }
  0x58   :  { %1100 = vmatmul.mubr.bf16.vlgmr.msra.gmra.mrb[0].mxu0 %v56_v13 }
  0x59   :  { %1139 = vmatprep.mubr.msk.bf16.mxu0 %vm1423_vm0, %v1422_v0  ;;  %1124 = vmatpush3.bf16.msra.mxu0 %v1267_v19  ;;  %v1296_v19 = vld [vmem:[#allocation7 + $0xa8] sm:$0xff]  }
  0x5a   :  { %1125 = vmatprep.subr.bf16.mxu0 %v1422_v0 }
  0x5d   :  { %1126 = vmatpush3.bf16.msra.mxu0 %v1268_v20  ;;  %v1297_v20 = vld [vmem:[#allocation7 + $0xb0] sm:$0xff]  }
  0x5e   :  { %1127 = vmatprep.subr.bf16.mxu0 %v1422_v0 }
  0x61   :  { %1128 = vmatpush3.bf16.msra.mxu0 %v1269_v21  ;;  %v1298_v21 = vld [vmem:[#allocation7 + $0xb8] sm:$0xff]  }
  0x62   :  { %1129 = vmatprep.subr.bf16.mxu0 %v1422_v0 }
  0x65   :  { %1130 = vmatpush3.bf16.msra.mxu0 %v1270_v22  ;;  %v1299_v22 = vld [vmem:[#allocation5 + $0xc0] sm:$0xff]  }
  0x66   :  { %1131 = vmatprep.subr.bf16.mxu0 %v1422_v0 }
  0x69   :  { %1132 = vmatpush3.bf16.msra.mxu0 %v1271_v23  ;;  %v1300_v23 = vld [vmem:[#allocation5 + $0xc8] sm:$0xff]  }
  0x6a   :  { %1133 = vmatprep.subr.bf16.mxu0 %v1422_v0 }
  0x6d   :  { %1134 = vmatpush3.bf16.msra.mxu0 %v1272_v24  ;;  %v1301_v24 = vld [vmem:[#allocation5 + $0xd0] sm:$0xff]  }
  0x6e   :  { %1135 = vmatprep.subr.bf16.mxu0 %v1422_v0 }
  0x71   :  { %1136 = vmatpush3.bf16.msra.mxu0 %v1273_v35 }
  0x72   :  { %1137 = vmatprep.subr.bf16.mxu0 %v1422_v0 }
  0x75   :  { %1138 = vmatpush3.bf16.msra.mxu0 %v1274_v36 }
  0x76   :  { %1163 = vmatprep.subr.bf16.mxu0 %v1422_v0 }
 0x12b   :  { %v155_v25 = vpop.f32.mrb[0].mxu0 }
 0x12c   :  { %v162_v26 = vmul.f32 0.70710677, %v155_v25  ;;  %v1101_v27 = vpop.f32.mrb[1].mxu0  ;;  %v161_v31 = vmul.f32 0.5, %v155_v25  ;;  %v1302_v25 = vld [vmem:[#allocation5 + $0xd8] sm:$0xff]  }
 0x12d   :  { %v158_v28 = vpop.f32.mrb[2].mxu0  ;;  %v1304_v27 = vld [vmem:[#allocation5 + $0xe8] sm:$0xff]  }
 0x12e   :  { %1315 = verf.f32 %v162_v26  ;;  %v1102_v29 = vpop.f32.mrb[3].mxu0  ;;  %v1303_v26 = vld [vmem:[#allocation5 + $0xe0] sm:$0xff]  }
 0x138   :  { %v1316_v30 = vpop.eup %1315 }
 0x139   :  { %v164_v32 = vadd.f32 1.0, %v1316_v30 }
 0x13b   :  { %v165_v33 = vmul.f32 %v164_v32, %v161_v31 }
 0x13d   :  { %v166_v34 = vpack.c.bf16 %v165_v33, %v165_v33 }
 0x13f   :  { %1120 = vmatmul.mubr.bf16.vlgmr.msra.gmra.mrb[0].mxu1 %v166_v34 }
 0x140   :  { %1159 = vmatprep.mubr.msk.bf16.mxu1 %vm1423_vm0, %v1422_v0  ;;  %1144 = vmatpush3.bf16.msra.mxu1 %v1275_v37 }
 0x141   :  { %1145 = vmatprep.subr.bf16.mxu1 %v1422_v0 }
 0x144   :  { %1146 = vmatpush3.bf16.msra.mxu1 %v1276_v38  ;;  %v1305_v38 = vld [vmem:[#allocation5 + $0xf0] sm:$0xff]  }
 0x145   :  { %1147 = vmatprep.subr.bf16.mxu1 %v1422_v0 }
 0x148   :  { %1148 = vmatpush3.bf16.msra.mxu1 %v1277_v39  ;;  %v1306_v39 = vld [vmem:[#allocation5 + $0xf8] sm:$0xff]  }
 0x149   :  { %1149 = vmatprep.subr.bf16.mxu1 %v1422_v0 }
 0x14c   :  { %1150 = vmatpush3.bf16.msra.mxu1 %v1278_v47 }
 0x14d   :  { %1151 = vmatprep.subr.bf16.mxu1 %v1422_v0 }
 0x150   :  { %1152 = vmatpush3.bf16.msra.mxu1 %v1279_v48 }
 0x151   :  { %1153 = vmatprep.subr.bf16.mxu1 %v1422_v0 }
 0x154   :  { %1154 = vmatpush3.bf16.msra.mxu1 %v1280_v49 }
 0x155   :  { %1155 = vmatprep.subr.bf16.mxu1 %v1422_v0 }
 0x158   :  { %1156 = vmatpush3.bf16.msra.mxu1 %v1281_v50  ;;  %v1310_v50 = vld [vmem:[#allocation7 + $0xd8] sm:$0xff]  }
 0x159   :  { %1157 = vmatprep.subr.bf16.mxu1 %v1422_v0 }
 0x15c   :  { %1158 = vmatpush3.bf16.msra.mxu1 %v1282_v51  ;;  %v1311_v51 = vld [vmem:[#allocation7 + $0xe0] sm:$0xff]  }
 0x15d   :  { %1183 = vmatprep.subr.bf16.mxu1 %v1422_v0 }
 0x212   :  { %v265_v40 = vpop.f32.mrb[0].mxu1 }
 0x213   :  { %v271_v41 = vmul.f32 0.25, %v265_v40  ;;  %v1121_v42 = vpop.f32.mrb[1].mxu1  ;;  %v1307_v40 = vld [vmem:[#allocation7 + $0xc0] sm:$0xff]  }
 0x214   :  { %v268_v43 = vpop.f32.mrb[2].mxu1  ;;  %v1309_v42 = vld [vmem:[#allocation7 + $0xd0] sm:$0xff]  }
 0x215   :  { %v1529_v44 = vadd.f32 %v271_v41, %v1502_v12  ;;  %v1122_v45 = vpop.f32.mrb[3].mxu1  ;;  %v1308_v41 = vld [vmem:[#allocation7 + $0xc8] sm:$0xff]  }
 0x217   :  { %v273_v46 = vpack.c.bf16 %v1529_v44, %v1529_v44 }
 0x219   :  { %1140 = vmatmul.mubr.bf16.vlgmr.msra.gmra.mrb[4].mxu0 %v273_v46 }
 0x21a   :  { %1179 = vmatprep.mubr.msk.bf16.mxu0 %vm1423_vm0, %v1422_v0  ;;  %1164 = vmatpush3.bf16.msra.mxu0 %v1283_v52  ;;  %v1312_v52 = vld [vmem:[#allocation7 + $0xe8] sm:$0xff]  }
 0x21b   :  { %1165 = vmatprep.subr.bf16.mxu0 %v1422_v0 }
 0x21e   :  { %1166 = vmatpush3.bf16.msra.mxu0 %v1284_v53  ;;  %v1313_v53 = vld [vmem:[#allocation7 + $0xf0] sm:$0xff]  }
 0x21f   :  { %1167 = vmatprep.subr.bf16.mxu0 %v1422_v0 }
 0x222   :  { %1168 = vmatpush3.bf16.msra.mxu0 %v1285_v54  ;;  %v1314_v54 = vld [vmem:[#allocation7 + $0xf8] sm:$0xff]  }
 0x223   :  { %1169 = vmatprep.subr.bf16.mxu0 %v1422_v0 }
 0x226   :  { %1170 = vmatpush3.bf16.msra.mxu0 %v1286_v55 }
 0x227   :  { %1171 = vmatprep.subr.bf16.mxu0 %v1422_v0 }
 0x22a   :  { %1172 = vmatpush3.bf16.msra.mxu0 %v1287_v56 }
 0x22b   :  { %1173 = vmatprep.subr.bf16.mxu0 %v1422_v0 }
 0x22e   :  { %1174 = vmatpush3.bf16.msra.mxu0 %v1288_v57 }
 0x22f   :  { %1175 = vmatprep.subr.bf16.mxu0 %v1422_v0 }
 0x232   :  { %1176 = vmatpush3.bf16.msra.mxu0 %v1289_v5 }
 0x233   :  { %1177 = vmatprep.subr.bf16.mxu0 %v1422_v0 }
 0x236   :  { %1178 = vmatpush3.bf16.msra.mxu0 %v1290_v6 }
 0x237   :  { %1203 = vmatprep.subr.bf16.mxu0 %v1422_v0 }
 0x2ec   :  { %v373_v58 = vpop.f32.mrb[4].mxu0 }
 0x2ed   :  { %v380_v59 = vmul.f32 0.70710677, %v373_v58  ;;  %v1141_v60 = vpop.f32.mrb[5].mxu0  ;;  %v379_v1 = vmul.f32 0.5, %v373_v58 }
 0x2ee   :  { %v376_v61 = vpop.f32.mrb[6].mxu0 }
 0x2ef   :  { %1317 = verf.f32 %v380_v59  ;;  %v1142_v62 = vpop.f32.mrb[7].mxu0 }
 0x2f9   :  { %v1318_v63 = vpop.eup %1317 }
 0x2fa   :  { %v382_v2 = vadd.f32 1.0, %v1318_v63 }
 0x2fc   :  { %v383_v3 = vmul.f32 %v382_v2, %v379_v1 }
 0x2fe   :  { %v384_v4 = vpack.c.bf16 %v383_v3, %v383_v3 }
 0x300   :  { %1160 = vmatmul.mubr.bf16.vlgmr.msra.gmra.mrb[4].mxu1 %v384_v4 }
 0x301   :  { %1199 = vmatprep.mubr.msk.bf16.mxu1 %vm1423_vm0, %v1422_v0  ;;  %1184 = vmatpush3.bf16.msra.mxu1 %v1291_v7 }
 0x302   :  { %1185 = vmatprep.subr.bf16.mxu1 %v1422_v0 }
 0x305   :  { %1186 = vmatpush3.bf16.msra.mxu1 %v1292_v8 }
 0x306   :  { %1187 = vmatprep.subr.bf16.mxu1 %v1422_v0 }
 0x309   :  { %1188 = vmatpush3.bf16.msra.mxu1 %v1293_v9 }
 0x30a   :  { %1189 = vmatprep.subr.bf16.mxu1 %v1422_v0 }
 0x30d   :  { %1190 = vmatpush3.bf16.msra.mxu1 %v1294_v17 }
 0x30e   :  { %1191 = vmatprep.subr.bf16.mxu1 %v1422_v0 }
 0x311   :  { %1192 = vmatpush3.bf16.msra.mxu1 %v1295_v18 }
 0x312   :  { %1193 = vmatprep.subr.bf16.mxu1 %v1422_v0 }
 0x315   :  { %1194 = vmatpush3.bf16.msra.mxu1 %v1296_v19 }
 0x316   :  { %1195 = vmatprep.subr.bf16.mxu1 %v1422_v0 }
 0x319   :  { %1196 = vmatpush3.bf16.msra.mxu1 %v1297_v20 }
 0x31a   :  { %1197 = vmatprep.subr.bf16.mxu1 %v1422_v0 }
 0x31d   :  { %1198 = vmatpush3.bf16.msra.mxu1 %v1298_v21 }
 0x31e   :  { %1223 = vmatprep.subr.bf16.mxu1 %v1422_v0 }
 0x3d3   :  { %v484_v10 = vpop.f32.mrb[4].mxu1 }
 0x3d4   :  { %v490_v11 = vmul.f32 0.25, %v484_v10  ;;  %v1161_v12 = vpop.f32.mrb[5].mxu1 }
 0x3d5   :  { %v487_v13 = vpop.f32.mrb[6].mxu1 }
 0x3d6   :  { %v1554_v14 = vadd.f32 %v490_v11, %v1529_v44  ;;  %v1162_v15 = vpop.f32.mrb[7].mxu1 }
 0x3d8   :  { %v492_v16 = vpack.c.bf16 %v1554_v14, %v1554_v14 }
 0x3da   :  { %1180 = vmatmul.mubr.bf16.vlgmr.msra.gmra.mrb[8].mxu0 %v492_v16 }
 0x3db   :  { %1219 = vmatprep.mubr.msk.bf16.mxu0 %vm1423_vm0, %v1422_v0  ;;  %1204 = vmatpush3.bf16.msra.mxu0 %v1299_v22 }
 0x3dc   :  { %1205 = vmatprep.subr.bf16.mxu0 %v1422_v0 }
 0x3df   :  { %1206 = vmatpush3.bf16.msra.mxu0 %v1300_v23 }
 0x3e0   :  { %1207 = vmatprep.subr.bf16.mxu0 %v1422_v0 }
 0x3e3   :  { %1208 = vmatpush3.bf16.msra.mxu0 %v1301_v24 }
 0x3e4   :  { %1209 = vmatprep.subr.bf16.mxu0 %v1422_v0 }
 0x3e7   :  { %1210 = vmatpush3.bf16.msra.mxu0 %v1302_v25 }
 0x3e8   :  { %1211 = vmatprep.subr.bf16.mxu0 %v1422_v0 }
 0x3eb   :  { %1212 = vmatpush3.bf16.msra.mxu0 %v1303_v26 }
 0x3ec   :  { %1213 = vmatprep.subr.bf16.mxu0 %v1422_v0 }
 0x3ef   :  { %1214 = vmatpush3.bf16.msra.mxu0 %v1304_v27 }
 0x3f0   :  { %1215 = vmatprep.subr.bf16.mxu0 %v1422_v0 }
 0x3f3   :  { %1216 = vmatpush3.bf16.msra.mxu0 %v1305_v38 }
 0x3f4   :  { %1217 = vmatprep.subr.bf16.mxu0 %v1422_v0 }
 0x3f7   :  { %1218 = vmatpush3.bf16.msra.mxu0 %v1306_v39 }
 0x4ad   :  { %v592_v28 = vpop.f32.mrb[8].mxu0 }
 0x4ae   :  { %v599_v29 = vmul.f32 0.70710677, %v592_v28  ;;  %v1181_v30 = vpop.f32.mrb[9].mxu0  ;;  %v598_v34 = vmul.f32 0.5, %v592_v28 }
 0x4af   :  { %v595_v31 = vpop.f32.mrb[10].mxu0 }
 0x4b0   :  { %1319 = verf.f32 %v599_v29  ;;  %v1182_v32 = vpop.f32.mrb[11].mxu0 }
 0x4ba   :  { %v1320_v33 = vpop.eup %1319 }
 0x4bb   :  { %v601_v35 = vadd.f32 1.0, %v1320_v33 }
 0x4bd   :  { %v602_v36 = vmul.f32 %v601_v35, %v598_v34 }
 0x4bf   :  { %v603_v37 = vpack.c.bf16 %v602_v36, %v602_v36 }
 0x4c1   :  { %1200 = vmatmul.mubr.bf16.vlgmr.msra.gmra.mrb[8].mxu1 %v603_v37 }
 0x4c2   :  { %1239 = vmatprep.mubr.msk.bf16.mxu1 %vm1423_vm0, %v1422_v0  ;;  %1224 = vmatpush3.bf16.msra.mxu1 %v1307_v40 }
 0x4c3   :  { %1225 = vmatprep.subr.bf16.mxu1 %v1422_v0 }
 0x4c6   :  { %1226 = vmatpush3.bf16.msra.mxu1 %v1308_v41 }
 0x4c7   :  { %1227 = vmatprep.subr.bf16.mxu1 %v1422_v0 }
 0x4ca   :  { %1228 = vmatpush3.bf16.msra.mxu1 %v1309_v42 }
 0x4cb   :  { %1229 = vmatprep.subr.bf16.mxu1 %v1422_v0 }
 0x4ce   :  { %1230 = vmatpush3.bf16.msra.mxu1 %v1310_v50 }
 0x4cf   :  { %1231 = vmatprep.subr.bf16.mxu1 %v1422_v0 }
 0x4d2   :  { %1232 = vmatpush3.bf16.msra.mxu1 %v1311_v51 }
 0x4d3   :  { %1233 = vmatprep.subr.bf16.mxu1 %v1422_v0 }
 0x4d6   :  { %1234 = vmatpush3.bf16.msra.mxu1 %v1312_v52 }
 0x4d7   :  { %1235 = vmatprep.subr.bf16.mxu1 %v1422_v0 }
 0x4da   :  { %1236 = vmatpush3.bf16.msra.mxu1 %v1313_v53 }
 0x4db   :  { %1237 = vmatprep.subr.bf16.mxu1 %v1422_v0 }
 0x4de   :  { %1238 = vmatpush3.bf16.msra.mxu1 %v1314_v54 }
 0x594   :  { %v703_v43 = vpop.f32.mrb[8].mxu1 }
 0x595   :  { %v709_v44 = vmul.f32 0.25, %v703_v43  ;;  %v1201_v45 = vpop.f32.mrb[9].mxu1 }
 0x596   :  { %v706_v46 = vpop.f32.mrb[10].mxu1 }
 0x597   :  { %v710_v47 = vadd.f32 %v709_v44, %v1554_v14  ;;  %v1202_v48 = vpop.f32.mrb[11].mxu1 }
 0x599   :  { %v711_v49 = vpack.c.bf16 %v710_v47, %v710_v47 }
 0x59b   :  { %1220 = vmatmul.mubr.bf16.vlgmr.msra.gmra.mrb[12].mxu0 %v711_v49 }
 0x66e   :  { %v811_v55 = vpop.f32.mrb[12].mxu0 }
 0x66f   :  { %v818_v56 = vmul.f32 0.70710677, %v811_v55  ;;  %v1221_v57 = vpop.f32.mrb[13].mxu0  ;;  %v817_v61 = vmul.f32 0.5, %v811_v55 }
 0x670   :  { %v814_v58 = vpop.f32.mrb[14].mxu0 }
 0x671   :  { %1321 = verf.f32 %v818_v56  ;;  %v1222_v59 = vpop.f32.mrb[15].mxu0 }
 0x67b   :  { %v1322_v60 = vpop.eup %1321 }
 0x67c   :  { %v820_v62 = vadd.f32 1.0, %v1322_v60 }
 0x67e   :  { %v821_v63 = vmul.f32 %v820_v62, %v817_v61 }
 0x680   :  { %v822_v1 = vpack.c.bf16 %v821_v63, %v821_v63 }
 0x682   :  { %1240 = vmatmul.mubr.bf16.vlgmr.msra.gmra.mrb[12].mxu1 %v822_v1 }
 0x755   :  { %v922_v2 = vpop.f32.mrb[12].mxu1 }
 0x756   :  { %v928_v3 = vmul.f32 0.25, %v922_v2  ;;  %v1241_v4 = vpop.f32.mrb[13].mxu1 }
 0x757   :  { %v925_v0 = vpop.f32.mrb[14].mxu1 }
 0x758   :  { %v929_v5 = vadd.f32 %v928_v3, %v710_v47  ;;  %v1242_v6 = vpop.f32.mrb[15].mxu1 }
 0x75a   :  { %930 = vst [vmem:[#allocation8] sm:$0xff] %v929_v5 }
 0x75b   :  { %1400 = shalt.err (!%p1397_p0)
}
 0x75c   :  { %s1401_s25 = scalar_lea.hbm %s1597_s3, 128 }
 0x75d   :  { %p1402_p1 = scmp.ne.s32.totalorder %s1597_s3, %s1401_s25  ;;  %p1405_p2 = scmp.lt.u32.totalorder %s1401_s25, %s1597_s3 }
 0x75f   :  { %p1407_p3 = pnand %p1405_p2, %p1402_p1 }
 0x761   :  { %1410 = shalt.err (!%p1407_p3)
}
 0x762   :  { %940 = dma.vmem_to_hbm [thread:$0]  %s938_s21, 128, %s1597_s3, [#allocation4]  }
 0x763   :  { %1415 = dma.done.wait [#allocation4], 128  }
 0x764   :  { %1416 = vsyncadd [#allocation4], 4294967168 }
 0x765   :  { %944 = vsyncpa [#allocation3], 1 }
 0x766   :  { %945 = vsyncpa [#allocation6], 1 }
 0x767   :  { %946 = vsyncpa [#allocation4], 1 }

</bundles_post_ra>
